<compile_context>
chip_gen: v6e
topology: v6e:2x2x1
jax: 0.10.0
libtpu: 0.0.40
codegen_flags: <defaults>
</compile_context>

<pallas_src>
import jax
import jax.numpy as jnp
from jax.experimental import pallas as pl
from jax.experimental.pallas import tpu as pltpu


def _round_up(a, b):
    return ((a + b - 1) // b) * b


def _cwfc_matmul_kernel(x_ref, w_ref, o_ref, acc_ref):
    # x_ref: (tm, tk)   w_ref: (tk, tn)   o_ref: (tm, tn)   acc_ref: (tm, tn) f32
    @pl.when(pl.program_id(2) == 0)
    def _init():
        acc_ref[...] = jnp.zeros_like(acc_ref)

    acc_ref[...] += jnp.dot(
        x_ref[...], w_ref[...], preferred_element_type=jnp.float32
    )

    @pl.when(pl.program_id(2) == pl.num_programs(2) - 1)
    def _store():
        o_ref[...] = acc_ref[...].astype(o_ref.dtype)


def channel_wise_fc(x, weight, *, tm=None, tn=None, tk=None, compute_dtype=None):
    """x: (N, C, H, W); weight: (H*W, H*W).  Returns (N, C, H, W)."""
    N, C, H, W = x.shape
    M = N * C
    K = H * W
    assert weight.shape == (K, K)

    out_dtype = x.dtype
    op_dtype = jnp.dtype(compute_dtype) if compute_dtype is not None else jnp.dtype(x.dtype)

    # ---- tile / padding selection -----------------------------------------
    # Rows (M = N*C): 256-row tiles once M is large, else one block covering
    # the (sublane-padded) problem -> no pointless 1-row-tile grid steps.
    Mp = _round_up(M, 8)
    tm = tm if tm is not None else min(256, Mp)
    Mp = _round_up(Mp, tm)

    # Contraction dim: pad lanes to 128, tile at <=512.
    Kc = _round_up(K, 128)
    tk = tk if tk is not None else min(512, Kc)
    Kc = _round_up(Kc, tk)

    # Output-column dim: pad lanes to 128, tile at <=256 (fills MXU columns on
    # v6e/v7x, keeps output stores unmasked / lane-dense).
    Kn = _round_up(K, 128)
    tn = tn if tn is not None else min(256, Kn)
    Kn = _round_up(Kn, tn)

    # ---- pad / cast operands (zero padding keeps the matmul exact) --------
    x2d = x.reshape(M, K)
    if (Mp, Kc) != (M, K):
        x2d = jnp.pad(x2d, ((0, Mp - M), (0, Kc - K)))
    w2d = weight
    if (Kc, Kn) != (K, K):
        w2d = jnp.pad(weight, ((0, Kc - K), (0, Kn - K)))
    if x2d.dtype != op_dtype:
        x2d = x2d.astype(op_dtype)
    if w2d.dtype != op_dtype:
        w2d = w2d.astype(op_dtype)

    # ---- VMEM budget (double-buffered inputs/outputs + f32 accumulator) ---
    in_isz = op_dtype.itemsize
    out_isz = jnp.dtype(out_dtype).itemsize
    vmem_need = (2 * (tm * tk + tk * tn) * in_isz
                 + 2 * tm * tn * out_isz
                 + tm * tn * 4)
    vmem_limit = int(min(max(2 * vmem_need, 32 * 1024 * 1024), 64 * 1024 * 1024))

    cost = pl.CostEstimate(
        flops=2 * M * K * K,
        transcendentals=0,
        bytes_accessed=(M * K + K * K + M * K) * out_isz,
    )

    grid = (Mp // tm, Kn // tn, Kc // tk)

    out2d = pl.pallas_call(
        _cwfc_matmul_kernel,
        out_shape=jax.ShapeDtypeStruct((Mp, Kn), out_dtype),
        grid_spec=pltpu.PrefetchScalarGridSpec(
            num_scalar_prefetch=0,
            grid=grid,
            in_specs=[
                pl.BlockSpec((tm, tk), lambda i, j, k: (i, k)),  # X row/k tile
                pl.BlockSpec((tk, tn), lambda i, j, k: (k, j)),  # weight strip
            ],
            out_specs=pl.BlockSpec((tm, tn), lambda i, j, k: (i, j)),
            scratch_shapes=[pltpu.VMEM((tm, tn), jnp.float32)],
        ),
        compiler_params=pltpu.CompilerParams(
            dimension_semantics=("parallel", "parallel", "arbitrary"),
            vmem_limit_bytes=vmem_limit,
        ),
        cost_estimate=cost,
    )(x2d, w2d)

    out2d = out2d[:M, :K]
    return out2d.reshape(N, C, H, W)


def reference(x, weight):
    N, C, H, W = x.shape
    return (x.reshape(N * C, H * W) @ weight).reshape(N, C, H, W)


if __name__ == "__main__":
    key = jax.random.PRNGKey(0)
    kx, kw, kx2, kw2 = jax.random.split(key, 4)

    # Case 1: shapes from the spec (size = H*W = 256, all aligned).
    N, C, H, W = 2, 4, 16, 16
    size = H * W
    x = jax.random.normal(kx, (N, C, H, W), dtype=jnp.float32)
    # matches nn.Parameter(...).uniform_(0, 0.1)
    weight = jax.random.uniform(kw, (size, size), dtype=jnp.float32,
                                minval=0.0, maxval=0.1)

    out = jax.block_until_ready(channel_wise_fc(x, weight))
    ref = reference(x, weight)
    assert out.shape == (N, C, H, W)
    assert jnp.allclose(out, ref, atol=1e-3, rtol=1e-3), "mismatch vs reference (case 1)"

    # Case 2: non-128-aligned spatial (14x14 -> K=196) and odd N*C=15;
    # exercises the padding / slicing path.
    N2, C2, H2, W2 = 3, 5, 14, 14
    size2 = H2 * W2
    x2 = jax.random.normal(kx2, (N2, C2, H2, W2), dtype=jnp.float32)
    w2 = jax.random.uniform(kw2, (size2, size2), dtype=jnp.float32,
                            minval=0.0, maxval=0.1)
    out2 = jax.block_until_ready(channel_wise_fc(x2, w2))
    ref2 = reference(x2, w2)
    assert out2.shape == (N2, C2, H2, W2)
    assert jnp.allclose(out2, ref2, atol=1e-3, rtol=1e-3), "mismatch vs reference (case 2)"

    print("KERNEL_OK")
</pallas_src>

<mosaic_0001>
module attributes {stable_mosaic.version = 11 : i64} {
  func.func @_cwfc_matmul_kernel(%arg0: i32, %arg1: i32, %arg2: i32, %arg3: memref<8x256xf32, #tpu.memory_space<vmem>>, %arg4: memref<256x256xf32, #tpu.memory_space<vmem>>, %arg5: memref<8x256xf32, #tpu.memory_space<vmem>>, %arg6: memref<8x256xf32, #tpu.memory_space<vmem>>) attributes {dimension_semantics = [#tpu.dimension_semantics<parallel>, #tpu.dimension_semantics<parallel>, #tpu.dimension_semantics<arbitrary>], iteration_bounds = array<i64: 1, 1, 1>, scalar_prefetch = 0 : i64, scratch_operands = 1 : i64, tpu.core_type = #tpu.core_type<tc>, window_params = [{transform_indices = @transform_0, window_bounds = array<i64: 8, 256>}, {transform_indices = @transform_1, window_bounds = array<i64: 256, 256>}, {transform_indices = @transform_2, window_bounds = array<i64: 8, 256>}]} {
    %c0_i32 = arith.constant 0 : i32
    %0 = arith.cmpi eq, %arg2, %c0_i32 : i32
    %1 = arith.extui %0 : i1 to i32
    %c0_i32_0 = arith.constant 0 : i32
    %2 = arith.cmpi ne, %1, %c0_i32_0 : i32
    scf.if %2 {
      %cst_10 = arith.constant 0.000000e+00 : f32
      %12 = vector.broadcast %cst_10 : f32 to vector<8x256xf32>
      %c0_11 = arith.constant 0 : index
      %c0_12 = arith.constant 0 : index
      %13 = vector.load %arg6[%c0_11, %c0_12] : memref<8x256xf32, #tpu.memory_space<vmem>>, vector<8x256xf32>
      tpu.vector_store %arg6[%c0_11, %c0_12], %12 {strides = array<i32>} : memref<8x256xf32, #tpu.memory_space<vmem>>, vector<8x256xf32>,
    } else {
    }
    %c0 = arith.constant 0 : index
    %c0_1 = arith.constant 0 : index
    %3 = vector.load %arg6[%c0, %c0_1] : memref<8x256xf32, #tpu.memory_space<vmem>>, vector<8x256xf32>
    %c0_2 = arith.constant 0 : index
    %c0_3 = arith.constant 0 : index
    %4 = vector.load %arg3[%c0_2, %c0_3] : memref<8x256xf32, #tpu.memory_space<vmem>>, vector<8x256xf32>
    %c0_4 = arith.constant 0 : index
    %c0_5 = arith.constant 0 : index
    %5 = vector.load %arg4[%c0_4, %c0_5] : memref<256x256xf32, #tpu.memory_space<vmem>>, vector<256x256xf32>
    %cst = arith.constant dense<0.000000e+00> : vector<8x256xf32>
    %6 = tpu.matmul %4, %5, %cst {dimension_numbers = #tpu.dot_dimension_numbers<[1], [0], [0], [1], [0, 0, 1, 1], [], []>} : vector<8x256xf32>, vector<256x256xf32>, vector<8x256xf32> -> vector<8x256xf32>
    %7 = arith.addf %3, %6 : vector<8x256xf32>
    %c0_6 = arith.constant 0 : index
    %c0_7 = arith.constant 0 : index
    %8 = vector.load %arg6[%c0_6, %c0_7] : memref<8x256xf32, #tpu.memory_space<vmem>>, vector<8x256xf32>
    tpu.vector_store %arg6[%c0_6, %c0_7], %7 {strides = array<i32>} : memref<8x256xf32, #tpu.memory_space<vmem>>, vector<8x256xf32>,
    %c0_i32_8 = arith.constant 0 : i32
    %9 = arith.cmpi eq, %arg2, %c0_i32_8 : i32
    %10 = arith.extui %9 : i1 to i32
    %c0_i32_9 = arith.constant 0 : i32
    %11 = arith.cmpi ne, %10, %c0_i32_9 : i32
    scf.if %11 {
      %c0_10 = arith.constant 0 : index
      %c0_11 = arith.constant 0 : index
      %12 = vector.load %arg6[%c0_10, %c0_11] : memref<8x256xf32, #tpu.memory_space<vmem>>, vector<8x256xf32>
      %c0_12 = arith.constant 0 : index
      %c0_13 = arith.constant 0 : index
      %13 = vector.load %arg5[%c0_12, %c0_13] : memref<8x256xf32, #tpu.memory_space<vmem>>, vector<8x256xf32>
      tpu.vector_store %arg5[%c0_12, %c0_13], %12 {strides = array<i32>} : memref<8x256xf32, #tpu.memory_space<vmem>>, vector<8x256xf32>,
    } else {
    }
    return
  }
  func.func @transform_0(%arg0: i32, %arg1: i32, %arg2: i32) -> (i32, i32) {
    %c0_i32 = arith.constant 0 : i32
    return %arg0, %arg2 : i32, i32
  }
  func.func @transform_1(%arg0: i32, %arg1: i32, %arg2: i32) -> (i32, i32) {
    %c0_i32 = arith.constant 0 : i32
    return %arg2, %arg1 : i32, i32
  }
  func.func @transform_2(%arg0: i32, %arg1: i32, %arg2: i32) -> (i32, i32) {
    %c0_i32 = arith.constant 0 : i32
    return %arg0, %arg1 : i32, i32
  }
}

</mosaic_0001>

<bundles_post_ra>
// kernel: tpu_custom_call.1
= control target key start
LH: loop header
LB: loop body
LE: loop exit
PB: predicated region body
PF: predicated region fallthrough
CT: control target
= control target key end

     0   :  { %7 = vsyncpa [#allocation4], 0  ;;  %s310_s0 = inlined_call_operand.hbm [shape: f32[8,256], index: 0, kind: input, shape index: {}]   ;;  %s311_s1 = inlined_call_operand.hbm [shape: f32[256,256], index: 1, kind: input, shape index: {}]   ;;  %s312_s2 = inlined_call_operand.hbm [shape: f32[8,256], index: 2, kind: output, shape index: {}]  }
   0x1   :  { %8 = vsyncpa [#allocation7], 0 }
   0x2   :  { %9 = vsyncpa [#allocation5], 0  ;;  %s281_s9 = smov [#allocation3]   ;;  %s282_s11 = smov [#allocation6]  }
   0x3   :  { %s16_s10 = sshll.u32 %s281_s9, 4  ;;  %s25_s12 = sshll.u32 %s282_s11, 4  ;;  %s17_s10 = int_to_ptr.vmem [resolvable:$true] %s16_s10  ;;  %s26_s12 = int_to_ptr.vmem [resolvable:$true] %s25_s12 }
   0x4   :  { %s223_s13 = scalar_lea.vmem %s17_s10, 256  ;;  %p228_p1 = scmp.lt.s32.totalorder %s17_s10, %s17_s10 }
   0x5   :  { %p224_p0 = scmp.ne.s32.totalorder %s17_s10, %s223_s13  ;;  %p229_p2 = scmp.lt.s32.totalorder %s223_s13, %s223_s13 }
   0x7   :  { %p230_p3 = por %p229_p2, %p228_p1 }
   0x9   :  { %p231_p4 = pnand %p230_p3, %p224_p0 }
   0xb   :  { %234 = shalt.err (!%p231_p4)
}
   0xc   :  { %19 = dma.hbm_to_vmem [thread:$0]  %s310_s0, 256, %s17_s10, [#allocation4]  }
   0xd   :  { %s243_s16 = scalar_lea.vmem %s26_s12, 8192  ;;  %p248_p6 = scmp.lt.s32.totalorder %s26_s12, %s26_s12 }
   0xe   :  { %p244_p5 = scmp.ne.s32.totalorder %s26_s12, %s243_s16  ;;  %p249_p7 = scmp.lt.s32.totalorder %s243_s16, %s243_s16 }
  0x10   :  { %p250_p8 = por %p249_p7, %p248_p6 }
  0x12   :  { %p251_p9 = pnand %p250_p8, %p244_p5 }
  0x14   :  { %254 = shalt.err (!%p251_p9)
}
  0x15   :  { %s283_s17 = smov 256   ;;  %s284_s18 = smov 16  }
  0x16   :  { %31 = dma.hbm_to_vmem [thread:$0]  %s311_s1, 8192, %s26_s12, [#allocation7], %s283_s17, %s283_s17, %s284_s18  }
  0x17   :  { %275 = dma.done.wait [#allocation4], 256  }
  0x18   :  { %276 = vsyncadd [#allocation4], 4294967040 }
  0x19   :  { %277 = dma.done.wait [#allocation7], 8192  }
  0x1a   :  { %278 = vsyncadd [#allocation7], 4294959104  ;;  %v79_v0 = vld [vmem:[#allocation6 + $0xf8] sm:$0xff]  ;;  %v78_v1 = vld [vmem:[#allocation6 + $0xf0] sm:$0xff]  ;;  %s285_s0 = smov [#allocation8]  }
  0x1b   :  { %v77_v2 = vld [vmem:[#allocation6 + $0xe8] sm:$0xff]  ;;  %112 = vmatprep.subr.mxu0 %v79_v0  ;;  %v76_v3 = vld [vmem:[#allocation6 + $0xe0] sm:$0xff]  ;;  %v75_v4 = vld [vmem:[#allocation6 + $0xd8] sm:$0xff]  ;;  %s200_s1 = sshll.u32 %s285_s0, 4  ;;  %s201_s1 = int_to_ptr.vmem [resolvable:$true] %s200_s1 }
  0x1c   :  { %113 = vmatpush1.msra.mxu0 %v78_v1  ;;  %v74_v5 = vld [vmem:[#allocation6 + $0xd0] sm:$0xff]  ;;  %v73_v6 = vld [vmem:[#allocation6 + $0xc8] sm:$0xff]  ;;  %v72_v7 = vld [vmem:[#allocation6 + $0xc0] sm:$0xff]  ;;  %s255_s21 = scalar_lea.vmem %s201_s1, 256  ;;  %p260_p11 = scmp.lt.s32.totalorder %s201_s1, %s201_s1 }
  0x1d   :  { %114 = vmatprep.subr.mxu0 %v77_v2  ;;  %v71_v8 = vld [vmem:[#allocation6 + $0xb8] sm:$0xff]  ;;  %v70_v9 = vld [vmem:[#allocation6 + $0xb0] sm:$0xff]  ;;  %v69_v10 = vld [vmem:[#allocation6 + $0xa8] sm:$0xff]  ;;  %p256_p10 = scmp.ne.s32.totalorder %s201_s1, %s255_s21  ;;  %p261_p12 = scmp.lt.s32.totalorder %s255_s21, %s255_s21 }
  0x1e   :  { %115 = vmatpush1.msra.mxu0 %v76_v3  ;;  %v68_v11 = vld [vmem:[#allocation6 + $0xa0] sm:$0xff]  ;;  %v67_v12 = vld [vmem:[#allocation6 + $0x98] sm:$0xff]  ;;  %v66_v13 = vld [vmem:[#allocation6 + $0x90] sm:$0xff] }
  0x1f   :  { %116 = vmatprep.subr.mxu0 %v75_v4  ;;  %v65_v14 = vld [vmem:[#allocation6 + $0x88] sm:$0xff]  ;;  %v64_v15 = vld [vmem:[#allocation6 + $0x80] sm:$0xff]  ;;  %v63_v16 = vld [vmem:[#allocation6 + $0x78] sm:$0xff]  ;;  %p262_p13 = por %p261_p12, %p260_p11 }
  0x20   :  { %117 = vmatpush1.msra.mxu0 %v74_v5  ;;  %v62_v17 = vld [vmem:[#allocation6 + $0x70] sm:$0xff]  ;;  %v61_v18 = vld [vmem:[#allocation6 + $0x68] sm:$0xff]  ;;  %v60_v19 = vld [vmem:[#allocation6 + $0x60] sm:$0xff] }
  0x21   :  { %118 = vmatprep.subr.mxu0 %v73_v6  ;;  %v59_v20 = vld [vmem:[#allocation6 + $0x58] sm:$0xff]  ;;  %v58_v21 = vld [vmem:[#allocation6 + $0x50] sm:$0xff]  ;;  %v57_v22 = vld [vmem:[#allocation6 + $0x48] sm:$0xff]  ;;  %p263_p0 = pnand %p262_p13, %p256_p10 }
  0x22   :  { %119 = vmatpush1.msra.mxu0 %v72_v7  ;;  %v56_v23 = vld [vmem:[#allocation6 + $0x40] sm:$0xff]  ;;  %v47_v24 = vld [vmem:[#allocation3 + $0x8] sm:$0xff]  ;;  %v54_v26 = vld [vmem:[#allocation6 + $0x30] sm:$0xff] }
  0x23   :  { %120 = vmatprep.subr.mxu0 %v71_v8  ;;  %v55_v25 = vld [vmem:[#allocation6 + $0x38] sm:$0xff]  ;;  %176 = vmatprep.mubr.f32.mxu0 %v47_v24  ;;  %v53_v27 = vld [vmem:[#allocation6 + $0x28] sm:$0xff]  ;;  %v52_v28 = vld [vmem:[#allocation6 + $0x20] sm:$0xff] }
  0x24   :  { %121 = vmatpush1.msra.mxu0 %v70_v9  ;;  %v51_v29 = vld [vmem:[#allocation6 + $0x18] sm:$0xff]  ;;  %v50_v30 = vld [vmem:[#allocation6 + $0x10] sm:$0xff]  ;;  %v49_v31 = vld [vmem:[#allocation6 + $0x8] sm:$0xff] }
  0x25   :  { %122 = vmatprep.subr.mxu0 %v69_v10  ;;  %v48_v32 = vld [vmem:[#allocation6] sm:$0xff]  ;;  %v111_v33 = vld [vmem:[#allocation6 + $0x1f8] sm:$0xff]  ;;  %v110_v34 = vld [vmem:[#allocation6 + $0x1f0] sm:$0xff] }
  0x26   :  { %123 = vmatpush1.msra.mxu0 %v68_v11  ;;  %v109_v35 = vld [vmem:[#allocation6 + $0x1e8] sm:$0xff]  ;;  %v108_v36 = vld [vmem:[#allocation6 + $0x1e0] sm:$0xff]  ;;  %v107_v37 = vld [vmem:[#allocation6 + $0x1d8] sm:$0xff] }
  0x27   :  { %124 = vmatprep.subr.mxu0 %v67_v12  ;;  %v106_v38 = vld [vmem:[#allocation6 + $0x1d0] sm:$0xff]  ;;  %v105_v39 = vld [vmem:[#allocation6 + $0x1c8] sm:$0xff]  ;;  %v104_v40 = vld [vmem:[#allocation6 + $0x1c0] sm:$0xff] }
  0x28   :  { %125 = vmatpush1.msra.mxu0 %v66_v13  ;;  %v103_v41 = vld [vmem:[#allocation6 + $0x1b8] sm:$0xff]  ;;  %v102_v42 = vld [vmem:[#allocation6 + $0x1b0] sm:$0xff]  ;;  %v101_v43 = vld [vmem:[#allocation6 + $0x1a8] sm:$0xff] }
  0x29   :  { %126 = vmatprep.subr.mxu0 %v65_v14  ;;  %v100_v44 = vld [vmem:[#allocation6 + $0x1a0] sm:$0xff]  ;;  %v99_v45 = vld [vmem:[#allocation6 + $0x198] sm:$0xff]  ;;  %v98_v46 = vld [vmem:[#allocation6 + $0x190] sm:$0xff] }
  0x2a   :  { %127 = vmatpush1.msra.mxu0 %v64_v15  ;;  %v97_v47 = vld [vmem:[#allocation6 + $0x188] sm:$0xff]  ;;  %v96_v48 = vld [vmem:[#allocation6 + $0x180] sm:$0xff]  ;;  %v95_v49 = vld [vmem:[#allocation6 + $0x178] sm:$0xff] }
  0x2b   :  { %128 = vmatprep.subr.mxu0 %v63_v16  ;;  %v94_v50 = vld [vmem:[#allocation6 + $0x170] sm:$0xff]  ;;  %v93_v51 = vld [vmem:[#allocation6 + $0x168] sm:$0xff]  ;;  %v92_v52 = vld [vmem:[#allocation6 + $0x160] sm:$0xff] }
  0x2c   :  { %129 = vmatpush1.msra.mxu0 %v62_v17  ;;  %v91_v53 = vld [vmem:[#allocation6 + $0x158] sm:$0xff]  ;;  %v90_v54 = vld [vmem:[#allocation6 + $0x150] sm:$0xff]  ;;  %v89_v55 = vld [vmem:[#allocation6 + $0x148] sm:$0xff] }
  0x2d   :  { %130 = vmatprep.subr.mxu0 %v61_v18  ;;  %v88_v56 = vld [vmem:[#allocation6 + $0x140] sm:$0xff]  ;;  %v87_v57 = vld [vmem:[#allocation6 + $0x138] sm:$0xff]  ;;  %v86_v58 = vld [vmem:[#allocation6 + $0x130] sm:$0xff] }
  0x2e   :  { %131 = vmatpush1.msra.mxu0 %v60_v19  ;;  %v85_v59 = vld [vmem:[#allocation6 + $0x128] sm:$0xff]  ;;  %v84_v60 = vld [vmem:[#allocation6 + $0x120] sm:$0xff]  ;;  %v83_v61 = vld [vmem:[#allocation6 + $0x118] sm:$0xff] }
  0x2f   :  { %132 = vmatprep.subr.mxu0 %v59_v20  ;;  %v82_v62 = vld [vmem:[#allocation6 + $0x110] sm:$0xff]  ;;  %v81_v63 = vld [vmem:[#allocation6 + $0x108] sm:$0xff]  ;;  %v80_v0 = vld [vmem:[#allocation6 + $0x100] sm:$0xff] }
  0x30   :  { %133 = vmatpush1.msra.mxu0 %v58_v21  ;;  %v46_v1 = vld [vmem:[#allocation3] sm:$0xff] }
  0x31   :  { %134 = vmatprep.subr.mxu0 %v57_v22 }
  0x32   :  { %135 = vmatpush1.msra.mxu0 %v56_v23 }
  0x33   :  { %136 = vmatprep.subr.mxu0 %v55_v25 }
  0x34   :  { %137 = vmatpush1.msra.mxu0 %v54_v26 }
  0x35   :  { %138 = vmatprep.subr.mxu0 %v53_v27 }
  0x36   :  { %139 = vmatpush1.msra.mxu0 %v52_v28 }
  0x37   :  { %140 = vmatprep.subr.mxu0 %v51_v29 }
  0x38   :  { %141 = vmatpush1.msra.mxu0 %v50_v30 }
  0x39   :  { %142 = vmatprep.subr.mxu0 %v49_v31 }
  0x3a   :  { %143 = vmatpush1.msra.mxu0 %v48_v32 }
  0x3b   :  { %144 = vmatprep.subr.mxu0 %v111_v33 }
  0x3c   :  { %145 = vmatpush2.msra.mxu0 %v110_v34 }
  0x3d   :  { %146 = vmatprep.subr.mxu0 %v109_v35 }
  0x3e   :  { %147 = vmatpush2.msra.mxu0 %v108_v36 }
  0x3f   :  { %148 = vmatprep.subr.mxu0 %v107_v37 }
  0x40   :  { %149 = vmatpush2.msra.mxu0 %v106_v38 }
  0x41   :  { %150 = vmatprep.subr.mxu0 %v105_v39 }
  0x42   :  { %151 = vmatpush2.msra.mxu0 %v104_v40 }
  0x43   :  { %152 = vmatprep.subr.mxu0 %v103_v41 }
  0x44   :  { %153 = vmatpush2.msra.mxu0 %v102_v42 }
  0x45   :  { %154 = vmatprep.subr.mxu0 %v101_v43 }
  0x46   :  { %155 = vmatpush2.msra.mxu0 %v100_v44 }
  0x47   :  { %156 = vmatprep.subr.mxu0 %v99_v45 }
  0x48   :  { %157 = vmatpush2.msra.mxu0 %v98_v46 }
  0x49   :  { %158 = vmatprep.subr.mxu0 %v97_v47 }
  0x4a   :  { %159 = vmatpush2.msra.mxu0 %v96_v48 }
  0x4b   :  { %160 = vmatprep.subr.mxu0 %v95_v49 }
  0x4c   :  { %161 = vmatpush2.msra.mxu0 %v94_v50 }
  0x4d   :  { %162 = vmatprep.subr.mxu0 %v93_v51 }
  0x4e   :  { %163 = vmatpush2.msra.mxu0 %v92_v52 }
  0x4f   :  { %164 = vmatprep.subr.mxu0 %v91_v53 }
  0x50   :  { %165 = vmatpush2.msra.mxu0 %v90_v54 }
  0x51   :  { %166 = vmatprep.subr.mxu0 %v89_v55 }
  0x52   :  { %167 = vmatpush2.msra.mxu0 %v88_v56 }
  0x53   :  { %168 = vmatprep.subr.mxu0 %v87_v57 }
  0x54   :  { %169 = vmatpush2.msra.mxu0 %v86_v58 }
  0x55   :  { %170 = vmatprep.subr.mxu0 %v85_v59 }
  0x56   :  { %171 = vmatpush2.msra.mxu0 %v84_v60 }
  0x57   :  { %172 = vmatprep.subr.mxu0 %v83_v61 }
  0x58   :  { %173 = vmatpush2.msra.mxu0 %v82_v62 }
  0x59   :  { %174 = vmatprep.subr.mxu0 %v81_v63 }
  0x5a   :  { %175 = vmatpush2.msra.mxu0 %v80_v0 }
  0x5b   :  { %177 = vmatmul.mubr.f32.vlgmr.msra.gmra.mxu0 %v46_v1 }
 0x11b   :  { %v178_v2 = vpop.f32.mrf.mxu0 }
 0x11c   :  { %192 = vst [vmem:[#allocation8] sm:$0xff] %v178_v2 }
 0x11d   :  { %v180_v3 = vpop.f32.mrf.mxu0 }
 0x11e   :  { %193 = vst [vmem:[#allocation8 + $0x8] sm:$0xff] %v180_v3 }
 0x11f   :  { %266 = shalt.err (!%p263_p0)
}
 0x120   :  { %203 = dma.vmem_to_hbm [thread:$0]  %s201_s1, 256, %s312_s2, [#allocation5]  }
 0x121   :  { %279 = dma.done.wait [#allocation5], 256  }
 0x122   :  { %280 = vsyncadd [#allocation5], 4294967040 }
 0x123   :  { %207 = vsyncpa [#allocation4], 1 }
 0x124   :  { %208 = vsyncpa [#allocation7], 1 }
 0x125   :  { %209 = vsyncpa [#allocation5], 1 }

</bundles_post_ra>
